<compile_context>
chip_gen: v6e
topology: v6e:2x2x1
jax: 0.10.0
libtpu: 0.0.40
codegen_flags: <defaults>
</compile_context>

<pallas_src>
import jax
import jax.numpy as jnp
from jax.experimental import pallas as pl
from jax.experimental.pallas import tpu as pltpu

# ----------------------- synthetic config (deterministic) -------------------
BATCH = 2
SEQ = 8
ITEM_FEATURES = ("item_id", "category", "brand")      # data_config.item_features
FEATURE_VOCAB = {"item_id": 100, "category": 20, "brand": 15}  # data_config.stats
EMBEDDING_DIM = 16                                     # model_config.embedding_dim
MLP_LAYERS = [64, 32]                                  # model_config.mlp_layers
TOTAL_EMB_DIM = EMBEDDING_DIM * len(ITEM_FEATURES)     # item_emb.total_embedding_dim

ROW_TILE_MAX = 256   # rows per grid step: multiple of 256 for v6e MXU rows,
                     # comfortably inside v7x's 64 MiB VMEM with 2x buffering.


def _round_up(x, m):
    return (x + m - 1) // m * m


# ------------------------------- Pallas kernel -------------------------------
def _make_kernel(num_feats: int, num_tail_layers: int):
    """kernel(ids, fused_w0, b0, [w_l, b_l]*num_tail_layers, out)."""

    def kernel(ids_ref, fused_ref, b0_ref, *refs):
        tail = refs[:2 * num_tail_layers]
        o_ref = refs[2 * num_tail_layers]

        ids = ids_ref[...]                       # (TM, F) int32, vocab-offset ids
        tm = ids.shape[0]
        v_pad = fused_ref.shape[0]

        # Fused MultiFeatEmbedding gather + concat + first Linear:
        # one boolean hit-mask over the padded concatenated vocab (per-feature
        # blocks are disjoint), then a single bf16 MXU matmul against T_bd@W1.
        iota = jax.lax.broadcasted_iota(jnp.int32, (tm, v_pad), 1)
        hit = ids[:, 0:1] == iota
        for f in range(1, num_feats):
            hit = jnp.logical_or(hit, ids[:, f:f + 1] == iota)
        onehot = jnp.where(hit, 1.0, 0.0).astype(jnp.bfloat16)   # exact 0/1

        h = jnp.dot(onehot, fused_ref[...],
                    preferred_element_type=jnp.float32) + b0_ref[...]
        if num_tail_layers > 0:
            h = jnp.maximum(h, 0.0)              # ReLU (fused layer is not last)

        # Remaining Linear layers; ReLU between, none after the last.
        for l in range(num_tail_layers):
            w = tail[2 * l][...]                 # (D_in, D_out) bf16
            b = tail[2 * l + 1][...]             # (1, D_out)    f32
            h = jnp.dot(h.astype(jnp.bfloat16), w,
                        preferred_element_type=jnp.float32) + b
            if l < num_tail_layers - 1:
                h = jnp.maximum(h, 0.0)

        o_ref[...] = h.astype(o_ref.dtype)

    return kernel


def mlp_item_encoder(ids, tables, weights, biases):
    """ids: [B, S, F] int32; returns [B, S, MLP_LAYERS[-1]] float32."""
    B, S, F = ids.shape
    N = B * S
    num_layers = len(weights)
    E = tables[0].shape[1]
    out_dim = weights[-1].shape[1]
    out_pad = _round_up(out_dim, 128)            # lane-dense output stores

    # ---------- one-time host-side weight prep (static parameters) ----------
    vocabs = [int(t.shape[0]) for t in tables]
    v_pad = _round_up(max(sum(vocabs), 8), 128)
    offs, acc = [], 0
    for v in vocabs:
        offs.append(acc)
        acc += v

    # Block-diagonal concat-embedding table [v_pad, F*E].
    t_bd = jnp.zeros((v_pad, F * E), jnp.float32)
    for f, t in enumerate(tables):
        t_bd = t_bd.at[offs[f]:offs[f] + vocabs[f],
                       f * E:(f + 1) * E].set(t.astype(jnp.float32))

    # Pre-fuse with the first Linear: onehot @ (T_bd @ W1) == (gather;concat) @ W1.
    fused_f32 = t_bd @ weights[0].astype(jnp.float32)          # (v_pad, D1)
    b0 = biases[0].reshape(1, -1).astype(jnp.float32)
    if num_layers == 1 and out_pad != out_dim:
        fused_f32 = jnp.pad(fused_f32, ((0, 0), (0, out_pad - out_dim)))
        b0 = jnp.pad(b0, ((0, 0), (0, out_pad - out_dim)))
    fused_w0 = fused_f32.astype(jnp.bfloat16)

    tail_inputs = []
    for l in range(1, num_layers):
        w = weights[l].astype(jnp.float32)
        b = biases[l].reshape(1, -1).astype(jnp.float32)
        if l == num_layers - 1 and out_pad != out_dim:          # pad to 128 lanes
            w = jnp.pad(w, ((0, 0), (0, out_pad - out_dim)))
            b = jnp.pad(b, ((0, 0), (0, out_pad - out_dim)))
        tail_inputs += [w.astype(jnp.bfloat16), b]

    # ---------- per-call input prep: offset ids, flatten, pad rows ----------
    ids_flat = (ids.reshape(N, F).astype(jnp.int32)
                + jnp.asarray(offs, jnp.int32)[None, :])
    tm = min(ROW_TILE_MAX, _round_up(N, 8))
    n_pad = _round_up(N, tm)
    if n_pad != N:
        ids_flat = jnp.pad(ids_flat, ((0, n_pad - N), (0, 0)))

    grid = (n_pad // tm,)
    in_specs = [pl.BlockSpec((tm, F), lambda i: (i, 0))]         # ids: row-tiled
    for arr in (fused_w0, b0, *tail_inputs):                     # weights: resident
        in_specs.append(pl.BlockSpec(arr.shape, lambda i: (0, 0)))
    out_specs = pl.BlockSpec((tm, out_pad), lambda i: (i, 0))

    out = pl.pallas_call(
        _make_kernel(F, num_layers - 1),
        out_shape=jax.ShapeDtypeStruct((n_pad, out_pad), jnp.float32),
        grid=grid,
        in_specs=in_specs,
        out_specs=out_specs,
        compiler_params=pltpu.CompilerParams(
            dimension_semantics=("parallel",)),  # row tiles split across TCs (v7x)
    )(ids_flat, fused_w0, b0, *tail_inputs)

    return out[:N, :out_dim].reshape(B, S, out_dim)


# ----------------------------- pure-JAX reference ----------------------------
def reference(ids, tables, weights, biases):
    embs = [tables[f][ids[..., f]] for f in range(len(tables))]
    h = jnp.concatenate(embs, axis=-1)
    for l, (w, b) in enumerate(zip(weights, biases)):
        h = h @ w + b
        if l < len(weights) - 1:
            h = jax.nn.relu(h)
    return h


# ------------------------------------ main -----------------------------------
if __name__ == "__main__":
    key = jax.random.PRNGKey(0)
    keys = jax.random.split(key, 2 + len(ITEM_FEATURES) + 2 * len(MLP_LAYERS))
    k_ids = keys[0]
    k_tabs = keys[1:1 + len(ITEM_FEATURES)]
    k_mlp = keys[1 + len(ITEM_FEATURES):]

    # Integer feature ids, one column per item feature.
    vocabs = [FEATURE_VOCAB[f] for f in ITEM_FEATURES]
    id_cols = []
    for i, v in enumerate(vocabs):
        id_cols.append(
            jax.random.randint(jax.random.fold_in(k_ids, i),
                               (BATCH, SEQ, 1), 0, v, dtype=jnp.int32))
    x_ids = jnp.concatenate(id_cols, axis=-1)            # [B, S, F]

    # Embedding tables (deterministic init, ~ nn.Embedding N(0,1) scaled).
    tables = [
        0.1 * jax.random.normal(k_tabs[i], (vocabs[i], EMBEDDING_DIM),
                                dtype=jnp.float32)
        for i in range(len(ITEM_FEATURES))
    ]

    # MLP weights/biases (deterministic uniform init, ~ nn.Linear default).
    dims = [TOTAL_EMB_DIM] + MLP_LAYERS
    weights, biases = [], []
    for l in range(len(MLP_LAYERS)):
        fan_in = dims[l]
        bound = 1.0 / (fan_in ** 0.5)
        weights.append(jax.random.uniform(
            k_mlp[2 * l], (dims[l], dims[l + 1]),
            minval=-bound, maxval=bound, dtype=jnp.float32))
        biases.append(jax.random.uniform(
            k_mlp[2 * l + 1], (dims[l + 1],),
            minval=-bound, maxval=bound, dtype=jnp.float32))

    out = mlp_item_encoder(x_ids, tables, weights, biases)
    out = jax.block_until_ready(out)

    ref = reference(x_ids, tables, weights, biases)
    assert out.shape == (BATCH, SEQ, MLP_LAYERS[-1])
    # Tolerance loosened vs the f32 reference: kernel weights are bf16 and the
    # embedding table is pre-fused with W1 (per perf review); observed error
    # is O(1e-3) on outputs of O(1e-1).
    assert jnp.allclose(out, ref, atol=2e-2, rtol=2e-2), "mismatch vs reference"

    print("KERNEL_OK")
</pallas_src>

<mosaic_0001>
module attributes {stable_mosaic.version = 11 : i64} {
  func.func @kernel(%arg0: i32, %arg1: memref<16x3xi32, #tpu.memory_space<vmem>>, %arg2: memref<256x64xbf16, #tpu.memory_space<vmem>>, %arg3: memref<1x64xf32, #tpu.memory_space<vmem>>, %arg4: memref<64x128xbf16, #tpu.memory_space<vmem>>, %arg5: memref<1x128xf32, #tpu.memory_space<vmem>>, %arg6: memref<16x128xf32, #tpu.memory_space<vmem>>) attributes {dimension_semantics = [#tpu.dimension_semantics<parallel>], iteration_bounds = array<i64: 1>, scalar_prefetch = 0 : i64, scratch_operands = 0 : i64, tpu.core_type = #tpu.core_type<tc>, window_params = [{transform_indices = @transform_0, window_bounds = array<i64: 16, 3>}, {pipeline_mode = #tpu.pipeline_mode<synchronous>, transform_indices = @transform_1, window_bounds = array<i64: 256, 64>}, {pipeline_mode = #tpu.pipeline_mode<synchronous>, transform_indices = @transform_2, window_bounds = array<i64: 1, 64>}, {pipeline_mode = #tpu.pipeline_mode<synchronous>, transform_indices = @transform_3, window_bounds = array<i64: 64, 128>}, {pipeline_mode = #tpu.pipeline_mode<synchronous>, transform_indices = @transform_4, window_bounds = array<i64: 1, 128>}, {transform_indices = @transform_5, window_bounds = array<i64: 16, 128>}]} {
    %c0 = arith.constant 0 : index
    %c0_0 = arith.constant 0 : index
    %0 = vector.load %arg1[%c0, %c0_0] : memref<16x3xi32, #tpu.memory_space<vmem>>, vector<16x3xi32>
    %1 = tpu.iota {dimensions = array<i32: 1>} : vector<16x256xi32>
    %2 = vector.extract_strided_slice %0 {offsets = [0, 0], sizes = [16, 1], strides = [1, 1]} : vector<16x3xi32> to vector<16x1xi32>
    %3 = vector.broadcast %2 : vector<16x1xi32> to vector<16x256xi32>
    %4 = arith.cmpi eq, %3, %1 : vector<16x256xi32>
    %5 = vector.extract_strided_slice %0 {offsets = [0, 1], sizes = [16, 1], strides = [1, 1]} : vector<16x3xi32> to vector<16x1xi32>
    %6 = vector.broadcast %5 : vector<16x1xi32> to vector<16x256xi32>
    %7 = arith.cmpi eq, %6, %1 : vector<16x256xi32>
    %8 = arith.ori %4, %7 : vector<16x256xi1>
    %9 = vector.extract_strided_slice %0 {offsets = [0, 2], sizes = [16, 1], strides = [1, 1]} : vector<16x3xi32> to vector<16x1xi32>
    %10 = vector.broadcast %9 : vector<16x1xi32> to vector<16x256xi32>
    %11 = arith.cmpi eq, %10, %1 : vector<16x256xi32>
    %12 = arith.ori %8, %11 : vector<16x256xi1>
    %cst = arith.constant 1.000000e+00 : f32
    %cst_1 = arith.constant 0.000000e+00 : f32
    %13 = vector.broadcast %cst : f32 to vector<16x256xf32>
    %14 = vector.broadcast %cst_1 : f32 to vector<16x256xf32>
    %15 = arith.select %12, %13, %14 : vector<16x256xi1>, vector<16x256xf32>
    %16 = arith.truncf %15 : vector<16x256xf32> to vector<16x256xbf16>
    %c0_2 = arith.constant 0 : index
    %c0_3 = arith.constant 0 : index
    %17 = vector.load %arg2[%c0_2, %c0_3] : memref<256x64xbf16, #tpu.memory_space<vmem>>, vector<256x64xbf16>
    %cst_4 = arith.constant dense<0.000000e+00> : vector<16x64xf32>
    %18 = tpu.matmul %16, %17, %cst_4 {dimension_numbers = #tpu.dot_dimension_numbers<[1], [0], [0], [1], [0, 0, 1, 1], [], []>} : vector<16x256xbf16>, vector<256x64xbf16>, vector<16x64xf32> -> vector<16x64xf32>
    %c0_5 = arith.constant 0 : index
    %c0_6 = arith.constant 0 : index
    %19 = vector.load %arg3[%c0_5, %c0_6] : memref<1x64xf32, #tpu.memory_space<vmem>>, vector<1x64xf32>
    %20 = vector.broadcast %19 : vector<1x64xf32> to vector<16x64xf32>
    %21 = arith.addf %18, %20 : vector<16x64xf32>
    %cst_7 = arith.constant 0.000000e+00 : f32
    %22 = vector.broadcast %cst_7 : f32 to vector<16x64xf32>
    %23 = arith.maximumf %21, %22 : vector<16x64xf32>
    %c0_8 = arith.constant 0 : index
    %c0_9 = arith.constant 0 : index
    %24 = vector.load %arg4[%c0_8, %c0_9] : memref<64x128xbf16, #tpu.memory_space<vmem>>, vector<64x128xbf16>
    %c0_10 = arith.constant 0 : index
    %c0_11 = arith.constant 0 : index
    %25 = vector.load %arg5[%c0_10, %c0_11] : memref<1x128xf32, #tpu.memory_space<vmem>>, vector<1x128xf32>
    %26 = arith.truncf %23 : vector<16x64xf32> to vector<16x64xbf16>
    %cst_12 = arith.constant dense<0.000000e+00> : vector<16x128xf32>
    %27 = tpu.matmul %26, %24, %cst_12 {dimension_numbers = #tpu.dot_dimension_numbers<[1], [0], [0], [1], [0, 0, 1, 1], [], []>} : vector<16x64xbf16>, vector<64x128xbf16>, vector<16x128xf32> -> vector<16x128xf32>
    %28 = vector.broadcast %25 : vector<1x128xf32> to vector<16x128xf32>
    %29 = arith.addf %27, %28 : vector<16x128xf32>
    %c0_13 = arith.constant 0 : index
    %c0_14 = arith.constant 0 : index
    %30 = vector.load %arg6[%c0_13, %c0_14] : memref<16x128xf32, #tpu.memory_space<vmem>>, vector<16x128xf32>
    tpu.vector_store %arg6[%c0_13, %c0_14], %29 {strides = array<i32>} : memref<16x128xf32, #tpu.memory_space<vmem>>, vector<16x128xf32>,
    return
  }
  func.func @transform_0(%arg0: i32) -> (i32, i32) {
    %c0_i32 = arith.constant 0 : i32
    %c0_i32_0 = arith.constant 0 : i32
    return %arg0, %c0_i32 : i32, i32
  }
  func.func @transform_1(%arg0: i32) -> (i32, i32) {
    %c0_i32 = arith.constant 0 : i32
    %c0_i32_0 = arith.constant 0 : i32
    %c0_i32_1 = arith.constant 0 : i32
    return %c0_i32, %c0_i32_0 : i32, i32
  }
  func.func @transform_2(%arg0: i32) -> (i32, i32) {
    %c0_i32 = arith.constant 0 : i32
    %c0_i32_0 = arith.constant 0 : i32
    %c0_i32_1 = arith.constant 0 : i32
    return %c0_i32, %c0_i32_0 : i32, i32
  }
  func.func @transform_3(%arg0: i32) -> (i32, i32) {
    %c0_i32 = arith.constant 0 : i32
    %c0_i32_0 = arith.constant 0 : i32
    %c0_i32_1 = arith.constant 0 : i32
    return %c0_i32, %c0_i32_0 : i32, i32
  }
  func.func @transform_4(%arg0: i32) -> (i32, i32) {
    %c0_i32 = arith.constant 0 : i32
    %c0_i32_0 = arith.constant 0 : i32
    %c0_i32_1 = arith.constant 0 : i32
    return %c0_i32, %c0_i32_0 : i32, i32
  }
  func.func @transform_5(%arg0: i32) -> (i32, i32) {
    %c0_i32 = arith.constant 0 : i32
    %c0_i32_0 = arith.constant 0 : i32
    return %arg0, %c0_i32 : i32, i32
  }
}

</mosaic_0001>

<bundles_post_ra>
// kernel: tpu_custom_call.1
= control target key start
LH: loop header
LB: loop body
LE: loop exit
PB: predicated region body
PF: predicated region fallthrough
CT: control target
= control target key end

     0   :  { %v473_v2 = vmov 1   ;;  %v474_v3 = vmov 0   ;;  %v475_v11 = vmov 2   ;;  %v476_v16 = vmov 0.0   ;;  %s587_s0 = inlined_call_operand.vmem [shape: s32[16,3], index: 0, kind: input, shape index: {}]   ;;  %s588_s1 = inlined_call_operand.vmem [shape: bf16[256,64], index: 1, kind: input, shape index: {}]   ;;  %s589_s2 = inlined_call_operand.vmem [shape: f32[1,64], index: 2, kind: input, shape index: {}]   ;;  %s590_s3 = inlined_call_operand.vmem [shape: bf16[64,128], index: 3, kind: input, shape index: {}]   ;;  %s591_s4 = inlined_call_operand.vmem [shape: f32[1,128], index: 4, kind: input, shape index: {}]   ;;  %s592_s5 = inlined_call_operand.hbm [shape: f32[16,128], index: 5, kind: output, shape index: {}]  }
   0x1   :  { %v22_v0 = vld [vmem:[%s587_s0] sm:$0xff]  ;;  %v431_v1 = vld [vmem:[%s588_s1 + $0x78] sm:$0xff]   ;;  %428 = vset.pattern.permute.xlu1 %v473_v2  ;;  %427 = vset.pattern.permute.xlu0 %v474_v3  ;;  %v23_v4 = vld [vmem:[%s587_s0 + $0x8] sm:$0xff] }
   0x2   :  { %38 = vperm.xlu1 %428, %v22_v0   ;;  %28 = vperm.xlu0 %427, %v22_v0   ;;  %v432_v5 = vld [vmem:[%s588_s1 + $0x38] sm:$0xff]   ;;  %v433_v6 = vld [vmem:[%s588_s1 + $0x70] sm:$0xff]   ;;  %v435_v8 = vld [vmem:[%s588_s1 + $0x68] sm:$0xff]  }
   0x3   :  { %379 = vmatprep.subr.bf16.mxu0 %v431_v1  ;;  %v434_v7 = vld [vmem:[%s588_s1 + $0x30] sm:$0xff]   ;;  %v436_v9 = vld [vmem:[%s588_s1 + $0x28] sm:$0xff]   ;;  %v437_v10 = vld [vmem:[%s588_s1 + $0x60] sm:$0xff]   ;;  %406 = vmatprep.subr.bf16.mxu1 %v476_v16 }
   0x4   :  { %380 = vmatpush3.bf16.msra.mxu0 %v432_v5  ;;  %v438_v12 = vld [vmem:[%s588_s1 + $0x20] sm:$0xff]   ;;  %v439_v13 = vld [vmem:[%s588_s1 + $0x58] sm:$0xff]   ;;  %v441_v15 = vld [vmem:[%s588_s1 + $0x50] sm:$0xff]  }
   0x5   :  { %381 = vmatprep.subr.bf16.mxu0 %v433_v6  ;;  %v440_v14 = vld [vmem:[%s588_s1 + $0x18] sm:$0xff]  }
   0x6   :  { %41 = vperm.xlu1 %428, %v23_v4   ;;  %31 = vperm.xlu0 %427, %v23_v4  }
   0x8   :  { %382 = vmatpush3.bf16.msra.mxu0 %v434_v7 }
   0x9   :  { %383 = vmatprep.subr.bf16.mxu0 %v435_v8 }
   0xa   :  { %430 = vset.pattern.permute.xlu1 %v475_v11  ;;  %429 = vset.pattern.permute.xlu0 %v475_v11 }
   0xb   :  { %55 = vperm.xlu1 %430, %v23_v4   ;;  %52 = vperm.xlu0 %429, %v22_v0  }
   0xc   :  { %384 = vmatpush3.bf16.msra.mxu0 %v436_v9 }
   0xd   :  { %385 = vmatprep.subr.bf16.mxu0 %v437_v10 }
  0x10   :  { %386 = vmatpush3.bf16.msra.mxu0 %v438_v12 }
  0x11   :  { %387 = vmatprep.subr.bf16.mxu0 %v439_v13 }
  0x12   :  { %10 = vsyncpa [#allocation3], 0  ;;  %v442_v17 = vld [vmem:[%s588_s1 + $0x10] sm:$0xff]   ;;  %v443_v18 = vld [vmem:[%s588_s1 + $0x48] sm:$0xff]   ;;  %v24_v22 = vlaneseq  ;;  %v477_v31 = vmov 1.0|1.0  }
  0x13   :  { %v444_v19 = vld [vmem:[%s588_s1 + $0x8] sm:$0xff]   ;;  %v445_v20 = vld [vmem:[%s588_s1 + $0x40] sm:$0xff]   ;;  %v447_v32 = vld [vmem:[%s590_s3 + $0x18] sm:$0xff]   ;;  %s479_s12 = smov [#allocation2]  }
  0x14   :  { %388 = vmatpush3.bf16.msra.mxu0 %v440_v14  ;;  %v446_v21 = vld [vmem:[%s588_s1] sm:$0xff]   ;;  %v25_v23 = vand.u32 127, %v24_v22  ;;  %407 = vmatpush3.bf16.msra.mxu1 %v447_v32  ;;  %v448_v33 = vld [vmem:[%s590_s3 + $0x10] sm:$0xff]   ;;  %v449_v34 = vld [vmem:[%s590_s3 + $0x8] sm:$0xff]   ;;  %s341_s13 = sshll.u32 %s479_s12, 4  ;;  %s342_s13 = int_to_ptr.vmem [resolvable:$true] %s341_s13 }
  0x15   :  { %389 = vmatprep.subr.bf16.mxu0 %v441_v15  ;;  %408 = vmatprep.subr.bf16.mxu1 %v476_v16  ;;  %v450_v35 = vld [vmem:[%s590_s3] sm:$0xff]   ;;  %p456_p1 = scmp.lt.s32.totalorder %s342_s13, %s342_s13 }
  0x16   :  { %v26_v26 = vadd.s32 128, %v25_v23  ;;  %v352_v39 = vld [vmem:[%s589_s2] ss:$0 sm:$0xff]  ;;  %s451_s2 = scalar_lea.vmem %s342_s13, 256 }
  0x17   :  { %v373_v48 = vld [vmem:[%s591_s4] ss:$0 sm:$0xff]  ;;  %p452_p0 = scmp.ne.s32.totalorder %s342_s13, %s451_s2  ;;  %p457_p2 = scmp.lt.s32.totalorder %s451_s2, %s451_s2 }
  0x18   :  { %390 = vmatpush3.bf16.msra.mxu0 %v442_v17  ;;  %409 = vmatpush3.bf16.msra.mxu1 %v448_v33 }
  0x19   :  { %391 = vmatprep.subr.bf16.mxu0 %v443_v18  ;;  %410 = vmatprep.subr.bf16.mxu1 %v476_v16  ;;  %p458_p3 = por %p457_p2, %p456_p1 }
  0x1b   :  { %p459_p4 = pnand %p458_p3, %p452_p0 }
  0x1c   :  { %392 = vmatpush3.bf16.msra.mxu0 %v444_v19  ;;  %411 = vmatpush3.bf16.msra.mxu1 %v449_v34 }
  0x1d   :  { %393 = vmatprep.subr.bf16.mxu0 %v445_v20  ;;  %412 = vmatprep.subr.bf16.mxu1 %v476_v16 }
  0x20   :  { %394 = vmatpush3.bf16.msra.mxu0 %v446_v21  ;;  %413 = vmatpush3.bf16.msra.mxu1 %v450_v35 }
  0x7d   :  { %v39_v24 = vpop.permute.xlu1 %38  ;;  %v29_v25 = vpop.permute.xlu0 %28 }
  0x7e   :  { %vm43_vm0 = vcmp.eq.s32.totalorder %v39_v24, %v25_v23  ;;  %vm33_vm1 = vcmp.eq.s32.totalorder %v29_v25, %v25_v23  ;;  %vm44_vm2 = vcmp.eq.s32.totalorder %v39_v24, %v26_v26  ;;  %vm34_vm3 = vcmp.eq.s32.totalorder %v29_v25, %v26_v26 }
  0x7f   :  { %vm47_vm8 = vmor %vm33_vm1, %vm43_vm0 }
  0x80   :  { %vm48_vm9 = vmor %vm34_vm3, %vm44_vm2 }
  0x81   :  { %v42_v27 = vpop.permute.xlu1 %41  ;;  %v32_v28 = vpop.permute.xlu0 %31 }
  0x82   :  { %vm45_vm4 = vcmp.eq.s32.totalorder %v42_v27, %v25_v23  ;;  %vm35_vm5 = vcmp.eq.s32.totalorder %v32_v28, %v25_v23  ;;  %vm46_vm6 = vcmp.eq.s32.totalorder %v42_v27, %v26_v26  ;;  %vm36_vm7 = vcmp.eq.s32.totalorder %v32_v28, %v26_v26 }
  0x83   :  { %vm49_vm10 = vmor %vm35_vm5, %vm45_vm4 }
  0x84   :  { %vm50_vm13 = vmor %vm36_vm7, %vm46_vm6  ;;  %vm478_vm6 = vmmov 0   ;;  %vm289_vm7 = vcmask 523264  }
  0x85   :  { %414 = vmatprep.mubr.msk.bf16.mxu1 %vm478_vm6, %v476_v16 }
  0x86   :  { %v56_v29 = vpop.permute.xlu1 %55  ;;  %v53_v30 = vpop.permute.xlu0 %52 }
  0x87   :  { %vm59_vm11 = vcmp.eq.s32.totalorder %v56_v29, %v25_v23  ;;  %vm57_vm12 = vcmp.eq.s32.totalorder %v53_v30, %v25_v23  ;;  %vm58_vm15 = vcmp.eq.s32.totalorder %v53_v30, %v26_v26  ;;  %vm60_vm0 = vcmp.eq.s32.totalorder %v56_v29, %v26_v26 }
  0x88   :  { %vm63_vm14 = vmor %vm49_vm10, %vm59_vm11 }
  0x89   :  { %vm61_vm1 = vmor %vm47_vm8, %vm57_vm12 }
  0x8a   :  { %vm371_vm2 = vmpackc.low %vm63_vm14, %vm61_vm1 }
  0x8b   :  { %vm62_vm3 = vmor %vm48_vm9, %vm58_vm15 }
  0x8c   :  { %vm64_vm4 = vmor %vm50_vm13, %vm60_vm0 }
  0x8d   :  { %vm369_vm5 = vmpackc.low %vm64_vm4, %vm62_vm3 }
  0x8e   :  { %370 = vmatprep.mubr.msk.bf16.mxu0 %vm369_vm5, %v477_v31 }
  0x8f   :  { %372 = vmatmul.mubr.msk.bf16.vlgmr.msra.gmra.mxu0 %vm371_vm2, %v477_v31 }
 0x14f   :  { %v395_v36 = vpop.f32.mrf.mxu0 }
 0x151   :  { %v396_v37 = vpop.f32.mrf.mxu0 }
 0x152   :  { %v397_v38 = vadd.f32 %v396_v37, %v395_v36 }
 0x153   :  { %v398_v40 = vpop.f32.mrf.mxu0 }
 0x154   :  { %v241_v42 = vadd.f32 %v397_v38, %v352_v39 }
 0x155   :  { %v399_v41 = vpop.f32.mrf.mxu0 }
 0x156   :  { %v400_v43 = vadd.f32 %v399_v41, %v398_v40  ;;  %v247_v45 = vmax.f32 %v241_v42, 0.0 }
 0x158   :  { %v244_v44 = vadd.f32 %v400_v43, %v352_v39 }
 0x15a   :  { %v248_v46 = vmax.f32 %v244_v44, 0.0 }
 0x15c   :  { %v258_v47 = vpack.c.bf16 %v248_v46, %v247_v45 }
 0x15e   :  { %415 = vmatmul.mubr.msk.bf16.vlgmr.msra.gmra.mxu1 %vm289_vm7, %v258_v47 }
 0x21e   :  { %v327_v49 = vpop.f32.mrf.mxu1 }
 0x21f   :  { %v328_v50 = vadd.f32 %v373_v48, %v327_v49 }
 0x220   :  { %v416_v51 = vpop.f32.mrf.mxu1 }
 0x221   :  { %334 = vst [vmem:[#allocation2] sm:$0xff] %v328_v50 }
 0x222   :  { %v330_v52 = vpop.f32.mrf.mxu1 }
 0x223   :  { %v331_v53 = vadd.f32 %v373_v48, %v330_v52 }
 0x224   :  { %v417_v54 = vpop.f32.mrf.mxu1 }
 0x225   :  { %335 = vst [vmem:[#allocation2 + $0x8] sm:$0xff] %v331_v53 }
 0x226   :  { %462 = shalt.err (!%p459_p4)
}
 0x227   :  { %s480_s14 = smov 128   ;;  %s481_s4 = smov 8  }
 0x228   :  { %347 = dma.vmem_to_hbm [thread:$0]  %s342_s13, 256, %s592_s5, [#allocation3], %s480_s14, %s480_s14, %s481_s4  }
 0x229   :  { %471 = dma.done.wait [#allocation3], 256  }
 0x22a   :  { %472 = vsyncadd [#allocation3], 4294967040 }
 0x22b   :  { %351 = vsyncpa [#allocation3], 1 }

</bundles_post_ra>
